<compile_context>
chip_gen: v7x
topology: tpu7x:2x2x1
jax: 0.10.0
libtpu: 0.0.40
codegen_flags: <defaults>
</compile_context>

<pallas_src>
import functools

import jax
import jax.numpy as jnp
from jax.experimental import pallas as pl
from jax.experimental.pallas import tpu as pltpu

_LANE = 128
_SUBLANE = 8
_MAX_ROW_TILE = 2048                      # cap on rows per block
_MAX_COL_TILE = 2048                      # cap on lanes per block (mult of 128)
_VMEM_STREAM_BUDGET = 24 * 1024 * 1024    # double-buffered streams budget
_VMEM_LIMIT_BYTES = 40 * 1024 * 1024      # scoped VMEM limit (safe on all gens)


def _choose_tiles(n_rows, n_cols, n_streams, itemsize):
    """Pick (tm, tn) so n_streams double-buffered (tm, tn) blocks fit the VMEM
    stream budget.  Blocks are (8, 128)-aligned (or equal to the full dim for
    tiny arrays) and never exceed the array dims; ragged edges are handled by
    the cdiv grid + masking."""
    if n_cols < _LANE:
        tn = n_cols                                        # full minor dim
    else:
        tn = min((n_cols // _LANE) * _LANE, _MAX_COL_TILE)

    bytes_per_row = 2 * n_streams * tn * max(int(itemsize), 4)
    tm = _VMEM_STREAM_BUDGET // max(bytes_per_row, 1)
    if n_rows < _SUBLANE:
        tm = n_rows                                        # full second-minor
    else:
        tm = max(_SUBLANE, (tm // _SUBLANE) * _SUBLANE)
        tm = min(tm, _MAX_ROW_TILE, (n_rows // _SUBLANE) * _SUBLANE)
    return tm, tn


# ----------------------------------------------------------------------------
# Kernel helpers
# ----------------------------------------------------------------------------
def _sq_err_f32(x_ref, t_ref):
    d = x_ref[...].astype(jnp.float32) - t_ref[...].astype(jnp.float32)
    return d * d


def _mask_oob(loss, n_rows, n_cols, mask_rows, mask_cols):
    """Zero out positions of edge blocks that fall outside (n_rows, n_cols).
    Static no-op when the grid divides the array evenly."""
    if not (mask_rows or mask_cols):
        return loss
    tm, tn = loss.shape
    m = None
    if mask_rows:
        r = jax.lax.broadcasted_iota(jnp.int32, loss.shape, 0) + pl.program_id(0) * tm
        m = r < n_rows
    if mask_cols:
        c = jax.lax.broadcasted_iota(jnp.int32, loss.shape, 1) + pl.program_id(1) * tn
        cm = c < n_cols
        m = cm if m is None else m & cm
    return jnp.where(m, loss, 0.0)


def _fold_rows(loss, fold):
    """Fold (tm, tn) -> (fold, tn) partial sums (vreg-aligned VPU adds)."""
    tm, tn = loss.shape
    return jnp.sum(loss.reshape(tm // fold, fold, tn), axis=0)


# ----------------------------------------------------------------------------
# Kernels
# ----------------------------------------------------------------------------
def _psum_kernel(x_ref, t_ref, o_ref, *, n_rows, n_cols, mask_rows, mask_cols, fold):
    loss = _sq_err_f32(x_ref, t_ref)
    loss = _mask_oob(loss, n_rows, n_cols, mask_rows, mask_cols)
    o_ref[...] = _fold_rows(loss, fold)


def _psum_w_kernel(x_ref, t_ref, w_ref, o_ref, *, n_rows, n_cols, mask_rows,
                   mask_cols, fold):
    loss = _sq_err_f32(x_ref, t_ref) * w_ref[...].astype(jnp.float32)
    loss = _mask_oob(loss, n_rows, n_cols, mask_rows, mask_cols)
    o_ref[...] = _fold_rows(loss, fold)


def _none_kernel(x_ref, t_ref, o_ref, *, clip_grad):
    loss = _sq_err_f32(x_ref, t_ref)
    if clip_grad is not None:
        loss = jnp.minimum(loss, jnp.float32(clip_grad))
    o_ref[...] = loss.astype(o_ref.dtype)


def _none_w_kernel(x_ref, t_ref, w_ref, o_ref, *, clip_grad):
    loss = _sq_err_f32(x_ref, t_ref) * w_ref[...].astype(jnp.float32)
    if clip_grad is not None:
        loss = jnp.minimum(loss, jnp.float32(clip_grad))
    o_ref[...] = loss.astype(o_ref.dtype)


# ----------------------------------------------------------------------------
# Wrappers
# ----------------------------------------------------------------------------
def _compiler_params():
    return pltpu.CompilerParams(
        dimension_semantics=("parallel", "parallel"),
        vmem_limit_bytes=_VMEM_LIMIT_BYTES,
    )


def _sq_err_sum(x, t, w2d):
    """Sum over all elements of the (optionally weighted) squared error, f32."""
    n_rows, n_cols = x.shape
    itemsize = max(x.dtype.itemsize, t.dtype.itemsize)
    tm, tn = _choose_tiles(n_rows, n_cols, n_streams=2, itemsize=itemsize)
    gm, gn = pl.cdiv(n_rows, tm), pl.cdiv(n_cols, tn)
    fold = _SUBLANE if tm % _SUBLANE == 0 else 1   # fold==1 only when n_rows < 8

    kw = dict(n_rows=n_rows, n_cols=n_cols,
              mask_rows=(n_rows % tm != 0), mask_cols=(n_cols % tn != 0),
              fold=fold)
    xt_spec = pl.BlockSpec((tm, tn), lambda i, j: (i, j))
    if w2d is None:
        kernel = functools.partial(_psum_kernel, **kw)
        in_specs = [xt_spec, xt_spec]
        args = (x, t)
    else:
        kernel = functools.partial(_psum_w_kernel, **kw)
        in_specs = [xt_spec, xt_spec, pl.BlockSpec((tm, 1), lambda i, j: (i, 0))]
        args = (x, t, w2d)

    partials = pl.pallas_call(
        kernel,
        out_shape=jax.ShapeDtypeStruct((gm * fold, gn * tn), jnp.float32),
        grid=(gm, gn),
        in_specs=in_specs,
        out_specs=pl.BlockSpec((fold, tn), lambda i, j: (i, j)),
        compiler_params=_compiler_params(),
    )(*args)
    # Final reduction of the tiny partial-sum array (~input_bytes / 256).
    return jnp.sum(partials)


def _sq_err_none(x, t, w2d, clip_grad, out_dtype):
    """Elementwise (optionally weighted, optionally clamped) squared error."""
    n_rows, n_cols = x.shape
    itemsize = max(x.dtype.itemsize, t.dtype.itemsize, jnp.dtype(out_dtype).itemsize)
    tm, tn = _choose_tiles(n_rows, n_cols, n_streams=3, itemsize=itemsize)
    gm, gn = pl.cdiv(n_rows, tm), pl.cdiv(n_cols, tn)

    xt_spec = pl.BlockSpec((tm, tn), lambda i, j: (i, j))
    if w2d is None:
        kernel = functools.partial(_none_kernel, clip_grad=clip_grad)
        in_specs = [xt_spec, xt_spec]
        args = (x, t)
    else:
        kernel = functools.partial(_none_w_kernel, clip_grad=clip_grad)
        in_specs = [xt_spec, xt_spec, pl.BlockSpec((tm, 1), lambda i, j: (i, 0))]
        args = (x, t, w2d)

    return pl.pallas_call(
        kernel,
        out_shape=jax.ShapeDtypeStruct((n_rows, n_cols), out_dtype),
        grid=(gm, gn),
        in_specs=in_specs,
        out_specs=xt_spec,
        compiler_params=_compiler_params(),
    )(*args)


class MeanSquaredError:
    """Pallas/JAX port of the PyTorch MeanSquaredError module (forward only)."""

    def __init__(self, reduction: str = "mean", clip_grad=None):
        self.reduction = reduction
        self.clip_grad = clip_grad

    def __call__(self, input, target, sample_weight=None):
        x = jnp.asarray(input)
        t = jnp.asarray(target)
        assert x.shape == t.shape and x.ndim == 2, "expects (N, D) inputs"
        n = x.shape[0]

        w2d = None
        dtypes = [x.dtype, t.dtype]
        if sample_weight is not None:
            w = jnp.asarray(sample_weight)
            w2d = w.reshape(n, 1)            # broadcasts over the feature axis
            dtypes.append(w.dtype)
        out_dtype = jnp.result_type(*dtypes)

        if self.reduction in ("mean", "sum"):
            loss = _sq_err_sum(x, t, w2d)                # f32 accumulation
            if self.reduction == "mean":
                loss = loss / jnp.float32(x.size)
            if self.clip_grad is not None:
                loss = jnp.minimum(loss, jnp.float32(self.clip_grad))
            return loss.astype(out_dtype)
        # reduction == 'none' (or any other string, matching the PyTorch module)
        return _sq_err_none(x, t, w2d, self.clip_grad, out_dtype)


# ----------------------------------------------------------------------------
# Reference (pure JAX) for verification
# ----------------------------------------------------------------------------
def _ref(x, t, w, reduction, clip_grad):
    loss = (x.astype(jnp.float32) - t.astype(jnp.float32)) ** 2
    if w is not None:
        loss = loss * w[:, None].astype(jnp.float32)
    if reduction == "mean":
        loss = loss.mean()
    elif reduction == "sum":
        loss = loss.sum()
    if clip_grad is not None:
        loss = jnp.minimum(loss, clip_grad)
    return loss


if __name__ == "__main__":
    key = jax.random.PRNGKey(0)
    k1, k2, k3 = jax.random.split(key, 3)

    ok = True

    # Small shapes consistent with the (N, D) contract.
    N, D = 16, 128
    x = jax.random.normal(k1, (N, D), jnp.float32)
    t = jax.random.normal(k2, (N, D), jnp.float32)
    w = jax.random.uniform(k3, (N,), jnp.float32)

    # mean reduction, with sample weights and clip
    out = jax.block_until_ready(MeanSquaredError("mean", 10.0)(x, t, w))
    ok &= bool(jnp.allclose(out, _ref(x, t, w, "mean", 10.0), rtol=1e-5, atol=1e-5))

    # sum reduction, no weights
    out = jax.block_until_ready(MeanSquaredError("sum")(x, t))
    ok &= bool(jnp.allclose(out, _ref(x, t, None, "sum", None), rtol=1e-5, atol=1e-4))

    # no reduction, with weights
    out = jax.block_until_ready(MeanSquaredError("none")(x, t, w))
    ok &= bool(jnp.allclose(out, _ref(x, t, w, "none", None), rtol=1e-5, atol=1e-5))

    # ragged shapes (exercise cdiv grid + edge masking paths)
    N2, D2 = 37, 200
    x2 = jax.random.normal(k1, (N2, D2), jnp.float32)
    t2 = jax.random.normal(k2, (N2, D2), jnp.float32)
    w2 = jax.random.uniform(k3, (N2,), jnp.float32)
    out = jax.block_until_ready(MeanSquaredError("mean")(x2, t2, w2))
    ok &= bool(jnp.allclose(out, _ref(x2, t2, w2, "mean", None), rtol=1e-5, atol=1e-5))
    out = jax.block_until_ready(MeanSquaredError("none")(x2, t2))
    ok &= bool(jnp.allclose(out, _ref(x2, t2, None, "none", None), rtol=1e-5, atol=1e-5))

    print("KERNEL_OK" if ok else "MISMATCH")
</pallas_src>

<mosaic_0001>
module attributes {stable_mosaic.version = 11 : i64} {
  func.func @_psum_w_kernel(%arg0: i32, %arg1: i32, %arg2: memref<16x128xf32, #tpu.memory_space<vmem>>, %arg3: memref<16x128xf32, #tpu.memory_space<vmem>>, %arg4: memref<16x1xf32, #tpu.memory_space<vmem>>, %arg5: memref<8x128xf32, #tpu.memory_space<vmem>>) attributes {dimension_semantics = [#tpu.dimension_semantics<parallel>, #tpu.dimension_semantics<parallel>], iteration_bounds = array<i64: 1, 1>, scalar_prefetch = 0 : i64, scratch_operands = 0 : i64, tpu.core_type = #tpu.core_type<tc>, window_params = [{transform_indices = @transform_0, window_bounds = array<i64: 16, 128>}, {transform_indices = @transform_1, window_bounds = array<i64: 16, 128>}, {transform_indices = @transform_2, window_bounds = array<i64: 16, 1>}, {transform_indices = @transform_3, window_bounds = array<i64: 8, 128>}]} {
    %c0 = arith.constant 0 : index
    %c0_0 = arith.constant 0 : index
    %0 = vector.load %arg2[%c0, %c0_0] : memref<16x128xf32, #tpu.memory_space<vmem>>, vector<16x128xf32>
    %c0_1 = arith.constant 0 : index
    %c0_2 = arith.constant 0 : index
    %1 = vector.load %arg3[%c0_1, %c0_2] : memref<16x128xf32, #tpu.memory_space<vmem>>, vector<16x128xf32>
    %2 = arith.subf %0, %1 : vector<16x128xf32>
    %3 = arith.mulf %2, %2 : vector<16x128xf32>
    %c0_3 = arith.constant 0 : index
    %c0_4 = arith.constant 0 : index
    %4 = vector.load %arg4[%c0_3, %c0_4] : memref<16x1xf32, #tpu.memory_space<vmem>>, vector<16x1xf32>
    %5 = vector.broadcast %4 : vector<16x1xf32> to vector<16x128xf32>
    %6 = arith.mulf %3, %5 : vector<16x128xf32>
    %7 = vector.shape_cast %6 : vector<16x128xf32> to vector<2x8x128xf32>
    %cst = arith.constant dense<0.000000e+00> : vector<8x128xf32>
    %8 = vector.multi_reduction <add>, %7, %cst [0] : vector<2x8x128xf32> to vector<8x128xf32>
    %c0_5 = arith.constant 0 : index
    %c0_6 = arith.constant 0 : index
    %9 = vector.load %arg5[%c0_5, %c0_6] : memref<8x128xf32, #tpu.memory_space<vmem>>, vector<8x128xf32>
    tpu.vector_store %arg5[%c0_5, %c0_6], %8 {strides = array<i32>} : memref<8x128xf32, #tpu.memory_space<vmem>>, vector<8x128xf32>,
    return
  }
  func.func @transform_0(%arg0: i32, %arg1: i32) -> (i32, i32) {
    %c0_i32 = arith.constant 0 : i32
    return %arg0, %arg1 : i32, i32
  }
  func.func @transform_1(%arg0: i32, %arg1: i32) -> (i32, i32) {
    %c0_i32 = arith.constant 0 : i32
    return %arg0, %arg1 : i32, i32
  }
  func.func @transform_2(%arg0: i32, %arg1: i32) -> (i32, i32) {
    %c0_i32 = arith.constant 0 : i32
    %c0_i32_0 = arith.constant 0 : i32
    return %arg0, %c0_i32 : i32, i32
  }
  func.func @transform_3(%arg0: i32, %arg1: i32) -> (i32, i32) {
    %c0_i32 = arith.constant 0 : i32
    return %arg0, %arg1 : i32, i32
  }
}

</mosaic_0001>

<bundles_post_ra>
// kernel: tpu_custom_call.1
= control target key start
LH: loop header
LB: loop body
LE: loop exit
PB: predicated region body
PF: predicated region fallthrough
CT: control target
= control target key end

     0   :  { %8 = vsyncpa [#allocation3], 0  ;;  %s183_s0 = inlined_call_operand.vmem [shape: f32[16,128], index: 0, kind: input, shape index: {}]   ;;  %s184_s1 = inlined_call_operand.hbm [shape: f32[16,128], index: 1, kind: input, shape index: {}]   ;;  %s185_s2 = inlined_call_operand.vmem [shape: f32[16,1], index: 2, kind: input, shape index: {}]   ;;  %s186_s3 = inlined_call_operand.hbm [shape: f32[8,128], index: 3, kind: output, shape index: {}]  }
   0x1   :  { %9 = vsyncpa [#allocation4], 0  ;;  %s122_s12 = smov [#allocation2]   ;;  %s74_s16 = scalar_lea.hbm %s184_s1, 256 }
   0x2   :  { %s17_s13 = sshll.u32 %s122_s12, 4  ;;  %p75_p0 = scmp.ne.s32.totalorder %s184_s1, %s74_s16  ;;  %s18_s13 = int_to_ptr.vmem [resolvable:$true] %s17_s13 }
   0x3   :  { %p78_p1 = scmp.lt.u32.totalorder %s74_s16, %s184_s1 }
   0x5   :  { %p80_p2 = pnand %p78_p1, %p75_p0 }
   0x7   :  { %83 = shalt.err (!%p80_p2)
}
   0x8   :  { %s84_s21 = scalar_lea.vmem %s18_s13, 256  ;;  %p89_p4 = scmp.lt.s32.totalorder %s18_s13, %s18_s13 }
   0x9   :  { %p85_p3 = scmp.ne.s32.totalorder %s18_s13, %s84_s21  ;;  %p90_p5 = scmp.lt.s32.totalorder %s84_s21, %s84_s21 }
   0xb   :  { %p91_p6 = por %p90_p5, %p89_p4 }
   0xd   :  { %p92_p7 = pnand %p91_p6, %p85_p3 }
   0xf   :  { %95 = shalt.err (!%p92_p7)
}
  0x10   :  { %s123_s22 = smov 128   ;;  %s124_s23 = smov 8  }
  0x11   :  { %23 = dma.hbm_to_vmem [thread:$0]  %s184_s1, 256, %s18_s13, [#allocation3], %s123_s22, %s123_s22, %s124_s23  }
  0x12   :  { %118 = dma.done.wait [#allocation3], 256  }
  0x13   :  { %119 = vsyncadd [#allocation3], 4294967040  ;;  %v125_v0 = vmov 0   ;;  %v37_v1 = vld [vmem:[%s185_s2] sm:$0xff]  ;;  %v38_v2 = vld [vmem:[%s185_s2 + $0x8] sm:$0xff]  ;;  %s126_s6 = smov [#allocation5]  }
  0x14   :  { %73 = vset.pattern.permute.xlu0 %v125_v0  ;;  %v29_v3 = vld [vmem:[%s183_s0] sm:$0xff]  ;;  %v30_v5 = vld [vmem:[%s183_s0 + $0x8] sm:$0xff]  ;;  %s59_s7 = sshll.u32 %s126_s6, 4  ;;  %s60_s7 = int_to_ptr.vmem [resolvable:$true] %s59_s7 }
  0x15   :  { %41 = vperm.xlu0 %73, %v37_v1   ;;  %v31_v4 = vld [vmem:[#allocation2] sm:$0xff]  ;;  %v32_v6 = vld [vmem:[#allocation2 + $0x8] sm:$0xff]  ;;  %s96_s2 = scalar_lea.vmem %s60_s7, 128  ;;  %p101_p9 = scmp.lt.s32.totalorder %s60_s7, %s60_s7 }
  0x16   :  { %v33_v7 = vsub.f32 %v29_v3, %v31_v4  ;;  %v34_v8 = vsub.f32 %v30_v5, %v32_v6  ;;  %p97_p8 = scmp.ne.s32.totalorder %s60_s7, %s96_s2  ;;  %p102_p10 = scmp.lt.s32.totalorder %s96_s2, %s96_s2 }
  0x18   :  { %v35_v10 = vmul.f32 %v33_v7, %v33_v7  ;;  %v36_v11 = vmul.f32 %v34_v8, %v34_v8  ;;  %p103_p11 = por %p102_p10, %p101_p9 }
  0x19   :  { %46 = vperm.xlu0 %73, %v38_v2  }
  0x1a   :  { %p104_p12 = pnand %p103_p11, %p97_p8 }
  0x94   :  { %v42_v9 = vpop.permute.xlu0 %41 }
  0x95   :  { %v49_v13 = vmul.f32 %v42_v9, %v35_v10 }
  0x98   :  { %v47_v12 = vpop.permute.xlu0 %46 }
  0x99   :  { %v50_v14 = vmul.f32 %v47_v12, %v36_v11 }
  0x9b   :  { %v51_v15 = vadd.f32 %v50_v14, %v49_v13 }
  0x9d   :  { %52 = vst [vmem:[#allocation5] sm:$0xff] %v51_v15 }
  0x9e   :  { %107 = shalt.err (!%p104_p12)
}
  0x9f   :  { %s108_s9 = scalar_lea.hbm %s186_s3, 128 }
  0xa0   :  { %p109_p13 = scmp.ne.s32.totalorder %s186_s3, %s108_s9  ;;  %p112_p0 = scmp.lt.u32.totalorder %s108_s9, %s186_s3 }
  0xa2   :  { %p114_p1 = pnand %p112_p0, %p109_p13 }
  0xa4   :  { %117 = shalt.err (!%p114_p1)
}
  0xa5   :  { %62 = dma.vmem_to_hbm [thread:$0]  %s60_s7, 128, %s186_s3, [#allocation4]  }
  0xa6   :  { %120 = dma.done.wait [#allocation4], 128  }
  0xa7   :  { %121 = vsyncadd [#allocation4], 4294967168 }
  0xa8   :  { %66 = vsyncpa [#allocation3], 1 }
  0xa9   :  { %67 = vsyncpa [#allocation4], 1 }

</bundles_post_ra>
